<compile_context>
chip_gen: v7x
topology: tpu7x:2x2x1
jax: 0.10.0
libtpu: 0.0.40
codegen_flags: <defaults>
</compile_context>

<pallas_src>
import jax
import jax.numpy as jnp
from jax.experimental import pallas as pl
from jax.experimental.pallas import tpu as pltpu


def _round_up(x, m):
    return ((x + m - 1) // m) * m


def _cdiv(a, b):
    return (a + b - 1) // b


def _kta_kernel(fi_ref, fj_ref, li_ref, lj_ref, kp_out_ref, sk_out_ref,
                kp_acc, sk_acc):
    # fi_ref: (TM, 2Q)  i-side pre-scaled features [cos/sqrt2 | sin/sqrt2]
    #                   (points on sublanes).
    # fj_ref: (2Q, TN)  j-side features (points on lanes).
    # li_ref: (TM, 1), lj_ref: (1, TN): labels (0 on padded points).
    # kp_out/sk_out: (8, 128) lane-dense per-i-block vector partial sums.
    # kp_acc/sk_acc: (8, 128) VMEM accumulators, live across the j axis.
    j = pl.program_id(1)

    @pl.when(j == 0)
    def _():
        kp_acc[...] = jnp.zeros_like(kp_acc)
        sk_acc[...] = jnp.zeros_like(sk_acc)

    tm = fi_ref.shape[0]
    q = fi_ref.shape[1] // 2
    tn = fj_ref.shape[1]
    n_strips = tm // 8
    n_grps = tn // 128

    fj = fj_ref[...]                               # (2Q, TN)
    lj = lj_ref[...]                               # (1, TN)

    # Loop interchange: process (8, TN) sublane strips so K / L*K / K*K stay
    # in vregs instead of Q full passes over a (TM, TN) VMEM temporary.
    @pl.loop(0, n_strips)
    def _(s):
        base = pl.multiple_of(s * 8, 8)
        fi = fi_ref[pl.ds(base, 8), :]             # (8, 2Q)
        li = li_ref[pl.ds(base, 8), :]             # (8, 1)

        # k_ij = prod_q cos^2(p_q (x_i - x_j)/2)
        #      = prod_q (0.5 + c'_i c'_j + s'_i s'_j)   (features pre-scaled
        #        by 1/sqrt2 in the wrapper -> no *0.5 per qubit here).
        k = 0.5 + fi[:, 0:1] * fj[0:1, :] + fi[:, q:q + 1] * fj[q:q + 1, :]
        for qq in range(1, q):                     # Q is small and static
            k = k * (0.5
                     + fi[:, qq:qq + 1] * fj[qq:qq + 1, :]
                     + fi[:, q + qq:q + qq + 1] * fj[q + qq:q + qq + 1, :])

        lk = (li * lj) * k                         # (8, TN)
        kk = k * k                                 # (8, TN)

        # Fold lane groups into an (8, 128) partial with tile-aligned VALU
        # adds (no cross-lane/XLU reduction inside the kernel).
        kp_p = lk[:, 0:128]
        sk_p = kk[:, 0:128]
        for g in range(1, n_grps):
            kp_p = kp_p + lk[:, g * 128:(g + 1) * 128]
            sk_p = sk_p + kk[:, g * 128:(g + 1) * 128]
        kp_acc[...] += kp_p
        sk_acc[...] += sk_p

    @pl.when(j == pl.num_programs(1) - 1)
    def _():
        kp_out_ref[...] = kp_acc[...]
        sk_out_ref[...] = sk_acc[...]


def quantum_net_forward(data, labels, params):
    """data: (N, Q) f32, labels: (N,) +-1 f32, params: (Q,) f32 -> scalar KTA."""
    data = jnp.asarray(data, jnp.float32)
    labels = jnp.asarray(labels, jnp.float32)
    params = jnp.asarray(params, jnp.float32)
    N, Q = data.shape

    # Per-point trig features: O(N*Q) transcendentals, pre-scaled by 1/sqrt2
    # so the in-kernel per-qubit factor is (0.5 + c'c' + s's').
    theta = data * params[None, :]
    inv_sqrt2 = 0.7071067811865476
    feats = jnp.concatenate(
        [jnp.cos(theta) * inv_sqrt2, jnp.sin(theta) * inv_sqrt2], axis=1)  # (N, 2Q)

    # Tile sizes: i -> sublanes (mult of 8), j -> lanes (mult of 128).
    # TM picked so n_i >= 2 when N allows (megacore on v7x); TM<=128/TN<=512
    # keeps buffers + temporaries small even for v5e's 16 MiB scoped VMEM.
    TM = min(_round_up(_cdiv(_round_up(N, 8), 2), 8), 128)
    TN = min(_round_up(N, 128), 512)
    Ni = _round_up(N, TM)
    Nj = _round_up(N, TN)
    n_i = Ni // TM
    n_j = Nj // TN

    def pad_rows(x, n_to):
        if n_to == x.shape[0]:
            return x
        return jnp.pad(x, ((0, n_to - x.shape[0]),) + ((0, 0),) * (x.ndim - 1))

    fi = pad_rows(feats, Ni)                      # (Ni, 2Q)  lane dim == 2Q
    fj = pad_rows(feats, Nj).T                    # (2Q, Nj)  points on lanes
    li = pad_rows(labels[:, None], Ni)            # (Ni, 1)
    lj = pad_rows(labels, Nj)[None, :]            # (1, Nj)

    kp_part, sk_part = pl.pallas_call(
        _kta_kernel,
        out_shape=(
            jax.ShapeDtypeStruct((n_i * 8, 128), jnp.float32),
            jax.ShapeDtypeStruct((n_i * 8, 128), jnp.float32),
        ),
        grid=(n_i, n_j),
        in_specs=[
            pl.BlockSpec((TM, 2 * Q), lambda i, j: (i, 0)),   # fi
            pl.BlockSpec((2 * Q, TN), lambda i, j: (0, j)),   # fj
            pl.BlockSpec((TM, 1), lambda i, j: (i, 0)),       # li
            pl.BlockSpec((1, TN), lambda i, j: (0, j)),       # lj
        ],
        out_specs=(
            pl.BlockSpec((8, 128), lambda i, j: (i, 0)),
            pl.BlockSpec((8, 128), lambda i, j: (i, 0)),
        ),
        scratch_shapes=[
            pltpu.VMEM((8, 128), jnp.float32),
            pltpu.VMEM((8, 128), jnp.float32),
        ],
        compiler_params=pltpu.CompilerParams(
            dimension_semantics=("parallel", "arbitrary"),
            vmem_limit_bytes=32 * 1024 * 1024),
    )(fi, fj, li, lj)

    kernel_polarity = jnp.sum(kp_part)
    # Padded pairs (>=1 padded endpoint) contribute exactly 0.25**Q each to
    # sum(K^2) (padded features are 0 -> every factor is exactly 0.5);
    # remove them analytically instead of masking inside the kernel.
    pad_pairs = Ni * Nj - N * N
    square_sum_k = jnp.sum(sk_part) - pad_pairs * (0.25 ** Q)
    # sum_ij (y_i y_j)^2 == (sum_i y_i^2)^2 — exact identity, done outside.
    square_sum_l = jnp.square(jnp.sum(labels * labels))
    return kernel_polarity * jax.lax.rsqrt(square_sum_k * square_sum_l)


def _reference_kta(data, labels, params):
    """Pure-JAX reference mirroring the double python loop in k_fusion."""
    diff = data[:, None, :] - data[None, :, :]                  # (N, N, Q)
    K = jnp.prod(jnp.cos(0.5 * params * diff) ** 2, axis=-1)    # (N, N)
    L = labels[:, None] * labels[None, :]
    kp = jnp.sum(L * K)
    sk = jnp.sum(K ** 2)
    sl = jnp.sum(L ** 2)
    return kp / jnp.sqrt(sk * sl)


if __name__ == "__main__":
    key = jax.random.PRNGKey(0)
    k_data, k_lab, k_par = jax.random.split(key, 3)

    n_points = 8     # number of data points
    n_qubits = 4     # qubits == per-point feature dimension

    data = jax.random.uniform(
        k_data, (n_points, n_qubits), dtype=jnp.float32,
        minval=0.0, maxval=jnp.pi)
    labels = jnp.where(
        jax.random.bernoulli(k_lab, 0.5, (n_points,)), 1.0, -1.0
    ).astype(jnp.float32)
    # deterministic trainable parameters (stand-in for nn.Parameter(parameters))
    params = jax.random.uniform(
        k_par, (n_qubits,), dtype=jnp.float32, minval=0.5, maxval=1.5)

    kta = quantum_net_forward(data, labels, params)
    jax.block_until_ready(kta)

    ref = _reference_kta(data, labels, params)
    assert jnp.allclose(kta, ref, atol=1e-5, rtol=1e-4), (kta, ref)

    print("KERNEL_OK")
</pallas_src>

<mosaic_0001>
module attributes {stable_mosaic.version = 11 : i64} {
  func.func @_kta_kernel(%arg0: i32, %arg1: i32, %arg2: memref<8x8xf32, #tpu.memory_space<vmem>>, %arg3: memref<8x128xf32, #tpu.memory_space<vmem>>, %arg4: memref<8x1xf32, #tpu.memory_space<vmem>>, %arg5: memref<1x128xf32, #tpu.memory_space<vmem>>, %arg6: memref<8x128xf32, #tpu.memory_space<vmem>>, %arg7: memref<8x128xf32, #tpu.memory_space<vmem>>, %arg8: memref<8x128xf32, #tpu.memory_space<vmem>>, %arg9: memref<8x128xf32, #tpu.memory_space<vmem>>) attributes {dimension_semantics = [#tpu.dimension_semantics<parallel>, #tpu.dimension_semantics<arbitrary>], iteration_bounds = array<i64: 1, 1>, scalar_prefetch = 0 : i64, scratch_operands = 2 : i64, tpu.core_type = #tpu.core_type<tc>, window_params = [{transform_indices = @transform_0, window_bounds = array<i64: 8, 8>}, {transform_indices = @transform_1, window_bounds = array<i64: 8, 128>}, {transform_indices = @transform_2, window_bounds = array<i64: 8, 1>}, {transform_indices = @transform_3, window_bounds = array<i64: 1, 128>}, {transform_indices = @transform_4, window_bounds = array<i64: 8, 128>}, {transform_indices = @transform_5, window_bounds = array<i64: 8, 128>}]} {
    %c0_i32 = arith.constant 0 : i32
    %0 = arith.cmpi eq, %arg1, %c0_i32 : i32
    %1 = arith.extui %0 : i1 to i32
    %c0_i32_0 = arith.constant 0 : i32
    %2 = arith.cmpi ne, %1, %c0_i32_0 : i32
    scf.if %2 {
      %cst_22 = arith.constant 0.000000e+00 : f32
      %82 = vector.broadcast %cst_22 : f32 to vector<8x128xf32>
      %c0_23 = arith.constant 0 : index
      %c0_24 = arith.constant 0 : index
      %83 = vector.load %arg8[%c0_23, %c0_24] : memref<8x128xf32, #tpu.memory_space<vmem>>, vector<8x128xf32>
      tpu.vector_store %arg8[%c0_23, %c0_24], %82 {strides = array<i32>} : memref<8x128xf32, #tpu.memory_space<vmem>>, vector<8x128xf32>,
      %cst_25 = arith.constant 0.000000e+00 : f32
      %84 = vector.broadcast %cst_25 : f32 to vector<8x128xf32>
      %c0_26 = arith.constant 0 : index
      %c0_27 = arith.constant 0 : index
      %85 = vector.load %arg9[%c0_26, %c0_27] : memref<8x128xf32, #tpu.memory_space<vmem>>, vector<8x128xf32>
      tpu.vector_store %arg9[%c0_26, %c0_27], %84 {strides = array<i32>} : memref<8x128xf32, #tpu.memory_space<vmem>>, vector<8x128xf32>,
    } else {
    }
    %c0 = arith.constant 0 : index
    %c0_1 = arith.constant 0 : index
    %3 = vector.load %arg3[%c0, %c0_1] : memref<8x128xf32, #tpu.memory_space<vmem>>, vector<8x128xf32>
    %c0_2 = arith.constant 0 : index
    %c0_3 = arith.constant 0 : index
    %4 = vector.load %arg5[%c0_2, %c0_3] : memref<1x128xf32, #tpu.memory_space<vmem>>, vector<1x128xf32>
    %c0_i32_4 = arith.constant 0 : i32
    %c1_i32 = arith.constant 1 : i32
    %5 = arith.muli %c0_i32_4, %c1_i32 : i32
    %c0_i32_5 = arith.constant 0 : i32
    %6 = arith.addi %c0_i32_5, %5 : i32
    %c8_i32 = arith.constant 8 : i32
    %7 = arith.muli %6, %c8_i32 : i32
    %8 = tpu.assume_multiple %7, 8 : i32
    %9 = arith.index_cast %8 : i32 to index
    %c0_6 = arith.constant 0 : index
    %10 = vector.load %arg2[%9, %c0_6] : memref<8x8xf32, #tpu.memory_space<vmem>>, vector<8x8xf32>
    %11 = arith.index_cast %8 : i32 to index
    %c0_7 = arith.constant 0 : index
    %12 = vector.load %arg4[%11, %c0_7] : memref<8x1xf32, #tpu.memory_space<vmem>>, vector<8x1xf32>
    %13 = vector.extract_strided_slice %10 {offsets = [0, 0], sizes = [8, 1], strides = [1, 1]} : vector<8x8xf32> to vector<8x1xf32>
    %14 = vector.extract_strided_slice %3 {offsets = [0, 0], sizes = [1, 128], strides = [1, 1]} : vector<8x128xf32> to vector<1x128xf32>
    %15 = vector.broadcast %13 : vector<8x1xf32> to vector<8x128xf32>
    %16 = vector.broadcast %14 : vector<1x128xf32> to vector<8x128xf32>
    %17 = arith.mulf %15, %16 : vector<8x128xf32>
    %cst = arith.constant 5.000000e-01 : f32
    %18 = vector.broadcast %cst : f32 to vector<8x128xf32>
    %19 = arith.addf %18, %17 : vector<8x128xf32>
    %20 = vector.extract_strided_slice %10 {offsets = [0, 4], sizes = [8, 1], strides = [1, 1]} : vector<8x8xf32> to vector<8x1xf32>
    %21 = vector.extract_strided_slice %3 {offsets = [4, 0], sizes = [1, 128], strides = [1, 1]} : vector<8x128xf32> to vector<1x128xf32>
    %22 = vector.broadcast %20 : vector<8x1xf32> to vector<8x128xf32>
    %23 = vector.broadcast %21 : vector<1x128xf32> to vector<8x128xf32>
    %24 = arith.mulf %22, %23 : vector<8x128xf32>
    %25 = arith.addf %19, %24 : vector<8x128xf32>
    %26 = vector.extract_strided_slice %10 {offsets = [0, 1], sizes = [8, 1], strides = [1, 1]} : vector<8x8xf32> to vector<8x1xf32>
    %27 = vector.extract_strided_slice %3 {offsets = [1, 0], sizes = [1, 128], strides = [1, 1]} : vector<8x128xf32> to vector<1x128xf32>
    %28 = vector.broadcast %26 : vector<8x1xf32> to vector<8x128xf32>
    %29 = vector.broadcast %27 : vector<1x128xf32> to vector<8x128xf32>
    %30 = arith.mulf %28, %29 : vector<8x128xf32>
    %cst_8 = arith.constant 5.000000e-01 : f32
    %31 = vector.broadcast %cst_8 : f32 to vector<8x128xf32>
    %32 = arith.addf %31, %30 : vector<8x128xf32>
    %33 = vector.extract_strided_slice %10 {offsets = [0, 5], sizes = [8, 1], strides = [1, 1]} : vector<8x8xf32> to vector<8x1xf32>
    %34 = vector.extract_strided_slice %3 {offsets = [5, 0], sizes = [1, 128], strides = [1, 1]} : vector<8x128xf32> to vector<1x128xf32>
    %35 = vector.broadcast %33 : vector<8x1xf32> to vector<8x128xf32>
    %36 = vector.broadcast %34 : vector<1x128xf32> to vector<8x128xf32>
    %37 = arith.mulf %35, %36 : vector<8x128xf32>
    %38 = arith.addf %32, %37 : vector<8x128xf32>
    %39 = arith.mulf %25, %38 : vector<8x128xf32>
    %40 = vector.extract_strided_slice %10 {offsets = [0, 2], sizes = [8, 1], strides = [1, 1]} : vector<8x8xf32> to vector<8x1xf32>
    %41 = vector.extract_strided_slice %3 {offsets = [2, 0], sizes = [1, 128], strides = [1, 1]} : vector<8x128xf32> to vector<1x128xf32>
    %42 = vector.broadcast %40 : vector<8x1xf32> to vector<8x128xf32>
    %43 = vector.broadcast %41 : vector<1x128xf32> to vector<8x128xf32>
    %44 = arith.mulf %42, %43 : vector<8x128xf32>
    %cst_9 = arith.constant 5.000000e-01 : f32
    %45 = vector.broadcast %cst_9 : f32 to vector<8x128xf32>
    %46 = arith.addf %45, %44 : vector<8x128xf32>
    %47 = vector.extract_strided_slice %10 {offsets = [0, 6], sizes = [8, 1], strides = [1, 1]} : vector<8x8xf32> to vector<8x1xf32>
    %48 = vector.extract_strided_slice %3 {offsets = [6, 0], sizes = [1, 128], strides = [1, 1]} : vector<8x128xf32> to vector<1x128xf32>
    %49 = vector.broadcast %47 : vector<8x1xf32> to vector<8x128xf32>
    %50 = vector.broadcast %48 : vector<1x128xf32> to vector<8x128xf32>
    %51 = arith.mulf %49, %50 : vector<8x128xf32>
    %52 = arith.addf %46, %51 : vector<8x128xf32>
    %53 = arith.mulf %39, %52 : vector<8x128xf32>
    %54 = vector.extract_strided_slice %10 {offsets = [0, 3], sizes = [8, 1], strides = [1, 1]} : vector<8x8xf32> to vector<8x1xf32>
    %55 = vector.extract_strided_slice %3 {offsets = [3, 0], sizes = [1, 128], strides = [1, 1]} : vector<8x128xf32> to vector<1x128xf32>
    %56 = vector.broadcast %54 : vector<8x1xf32> to vector<8x128xf32>
    %57 = vector.broadcast %55 : vector<1x128xf32> to vector<8x128xf32>
    %58 = arith.mulf %56, %57 : vector<8x128xf32>
    %cst_10 = arith.constant 5.000000e-01 : f32
    %59 = vector.broadcast %cst_10 : f32 to vector<8x128xf32>
    %60 = arith.addf %59, %58 : vector<8x128xf32>
    %61 = vector.extract_strided_slice %10 {offsets = [0, 7], sizes = [8, 1], strides = [1, 1]} : vector<8x8xf32> to vector<8x1xf32>
    %62 = vector.extract_strided_slice %3 {offsets = [7, 0], sizes = [1, 128], strides = [1, 1]} : vector<8x128xf32> to vector<1x128xf32>
    %63 = vector.broadcast %61 : vector<8x1xf32> to vector<8x128xf32>
    %64 = vector.broadcast %62 : vector<1x128xf32> to vector<8x128xf32>
    %65 = arith.mulf %63, %64 : vector<8x128xf32>
    %66 = arith.addf %60, %65 : vector<8x128xf32>
    %67 = arith.mulf %53, %66 : vector<8x128xf32>
    %68 = vector.broadcast %12 : vector<8x1xf32> to vector<8x128xf32>
    %69 = vector.broadcast %4 : vector<1x128xf32> to vector<8x128xf32>
    %70 = arith.mulf %68, %69 : vector<8x128xf32>
    %71 = arith.mulf %70, %67 : vector<8x128xf32>
    %72 = arith.mulf %67, %67 : vector<8x128xf32>
    %c0_11 = arith.constant 0 : index
    %c0_12 = arith.constant 0 : index
    %73 = vector.load %arg8[%c0_11, %c0_12] : memref<8x128xf32, #tpu.memory_space<vmem>>, vector<8x128xf32>
    %74 = arith.addf %73, %71 : vector<8x128xf32>
    %c0_13 = arith.constant 0 : index
    %c0_14 = arith.constant 0 : index
    %75 = vector.load %arg8[%c0_13, %c0_14] : memref<8x128xf32, #tpu.memory_space<vmem>>, vector<8x128xf32>
    tpu.vector_store %arg8[%c0_13, %c0_14], %74 {strides = array<i32>} : memref<8x128xf32, #tpu.memory_space<vmem>>, vector<8x128xf32>,
    %c0_15 = arith.constant 0 : index
    %c0_16 = arith.constant 0 : index
    %76 = vector.load %arg9[%c0_15, %c0_16] : memref<8x128xf32, #tpu.memory_space<vmem>>, vector<8x128xf32>
    %77 = arith.addf %76, %72 : vector<8x128xf32>
    %c0_17 = arith.constant 0 : index
    %c0_18 = arith.constant 0 : index
    %78 = vector.load %arg9[%c0_17, %c0_18] : memref<8x128xf32, #tpu.memory_space<vmem>>, vector<8x128xf32>
    tpu.vector_store %arg9[%c0_17, %c0_18], %77 {strides = array<i32>} : memref<8x128xf32, #tpu.memory_space<vmem>>, vector<8x128xf32>,
    %c1_i32_19 = arith.constant 1 : i32
    %c0_i32_20 = arith.constant 0 : i32
    %79 = arith.cmpi eq, %arg1, %c0_i32_20 : i32
    %80 = arith.extui %79 : i1 to i32
    %c0_i32_21 = arith.constant 0 : i32
    %81 = arith.cmpi ne, %80, %c0_i32_21 : i32
    scf.if %81 {
      %c0_22 = arith.constant 0 : index
      %c0_23 = arith.constant 0 : index
      %82 = vector.load %arg8[%c0_22, %c0_23] : memref<8x128xf32, #tpu.memory_space<vmem>>, vector<8x128xf32>
      %c0_24 = arith.constant 0 : index
      %c0_25 = arith.constant 0 : index
      %83 = vector.load %arg6[%c0_24, %c0_25] : memref<8x128xf32, #tpu.memory_space<vmem>>, vector<8x128xf32>
      tpu.vector_store %arg6[%c0_24, %c0_25], %82 {strides = array<i32>} : memref<8x128xf32, #tpu.memory_space<vmem>>, vector<8x128xf32>,
      %c0_26 = arith.constant 0 : index
      %c0_27 = arith.constant 0 : index
      %84 = vector.load %arg9[%c0_26, %c0_27] : memref<8x128xf32, #tpu.memory_space<vmem>>, vector<8x128xf32>
      %c0_28 = arith.constant 0 : index
      %c0_29 = arith.constant 0 : index
      %85 = vector.load %arg7[%c0_28, %c0_29] : memref<8x128xf32, #tpu.memory_space<vmem>>, vector<8x128xf32>
      tpu.vector_store %arg7[%c0_28, %c0_29], %84 {strides = array<i32>} : memref<8x128xf32, #tpu.memory_space<vmem>>, vector<8x128xf32>,
    } else {
    }
    return
  }
  func.func @transform_0(%arg0: i32, %arg1: i32) -> (i32, i32) {
    %c0_i32 = arith.constant 0 : i32
    %c0_i32_0 = arith.constant 0 : i32
    return %arg0, %c0_i32 : i32, i32
  }
  func.func @transform_1(%arg0: i32, %arg1: i32) -> (i32, i32) {
    %c0_i32 = arith.constant 0 : i32
    %c0_i32_0 = arith.constant 0 : i32
    return %c0_i32, %arg1 : i32, i32
  }
  func.func @transform_2(%arg0: i32, %arg1: i32) -> (i32, i32) {
    %c0_i32 = arith.constant 0 : i32
    %c0_i32_0 = arith.constant 0 : i32
    return %arg0, %c0_i32 : i32, i32
  }
  func.func @transform_3(%arg0: i32, %arg1: i32) -> (i32, i32) {
    %c0_i32 = arith.constant 0 : i32
    %c0_i32_0 = arith.constant 0 : i32
    return %c0_i32, %arg1 : i32, i32
  }
  func.func @transform_4(%arg0: i32, %arg1: i32) -> (i32, i32) {
    %c0_i32 = arith.constant 0 : i32
    %c0_i32_0 = arith.constant 0 : i32
    return %arg0, %c0_i32 : i32, i32
  }
  func.func @transform_5(%arg0: i32, %arg1: i32) -> (i32, i32) {
    %c0_i32 = arith.constant 0 : i32
    %c0_i32_0 = arith.constant 0 : i32
    return %arg0, %c0_i32 : i32, i32
  }
}

</mosaic_0001>

<bundles_post_ra>
// kernel: tpu_custom_call.1
= control target key start
LH: loop header
LB: loop body
LE: loop exit
PB: predicated region body
PF: predicated region fallthrough
CT: control target
= control target key end

     0   :  { %11 = vsyncpa [#allocation5], 0  ;;  %s362_s0 = inlined_call_operand.vmem [shape: f32[8,8], index: 0, kind: input, shape index: {}]   ;;  %s363_s1 = inlined_call_operand.hbm [shape: f32[8,128], index: 1, kind: input, shape index: {}]   ;;  %s364_s2 = inlined_call_operand.vmem [shape: f32[8,1], index: 2, kind: input, shape index: {}]   ;;  %s365_s3 = inlined_call_operand.vmem [shape: f32[1,128], index: 3, kind: input, shape index: {}]   ;;  %s366_s4 = inlined_call_operand.hbm [shape: f32[8,128], index: 4, kind: output, shape index: {0}]   ;;  %s367_s5 = inlined_call_operand.hbm [shape: f32[8,128], index: 5, kind: output, shape index: {1}]  }
   0x1   :  { %12 = vsyncpa [#allocation6], 0 }
   0x2   :  { %13 = vsyncpa [#allocation9], 0  ;;  %s276_s18 = smov [#allocation4]   ;;  %s204_s22 = scalar_lea.hbm %s363_s1, 128 }
   0x3   :  { %s22_s19 = sshll.u32 %s276_s18, 4  ;;  %p205_p0 = scmp.ne.s32.totalorder %s363_s1, %s204_s22  ;;  %s23_s19 = int_to_ptr.vmem [resolvable:$true] %s22_s19 }
   0x4   :  { %p208_p1 = scmp.lt.u32.totalorder %s204_s22, %s363_s1 }
   0x6   :  { %p210_p2 = pnand %p208_p1, %p205_p0 }
   0x8   :  { %213 = shalt.err (!%p210_p2)
}
   0x9   :  { %s214_s27 = scalar_lea.vmem %s23_s19, 128  ;;  %p219_p4 = scmp.lt.s32.totalorder %s23_s19, %s23_s19 }
   0xa   :  { %p215_p3 = scmp.ne.s32.totalorder %s23_s19, %s214_s27  ;;  %p220_p5 = scmp.lt.s32.totalorder %s214_s27, %s214_s27 }
   0xc   :  { %p221_p6 = por %p220_p5, %p219_p4 }
   0xe   :  { %p222_p7 = pnand %p221_p6, %p215_p3 }
  0x10   :  { %225 = shalt.err (!%p222_p7)
}
  0x11   :  { %25 = dma.hbm_to_vmem [thread:$0]  %s363_s1, 128, %s23_s19, [#allocation5]  }
  0x12   :  { %270 = dma.done.wait [#allocation5], 128  }
  0x13   :  { %271 = vsyncadd [#allocation5], 4294967168  ;;  %v277_v0 = vmov 4   ;;  %v278_v1 = vmov 0   ;;  %v41_v2 = vld [vmem:[%s362_s0] sm:$0xff]  ;;  %v279_v3 = vmov 5   ;;  %v48_v10 = vlaneseq }
  0x14   :  { %197 = vset.pattern.permute.xlu1 %v277_v0  ;;  %195 = vset.pattern.permute.xlu0 %v278_v1  ;;  %v280_v4 = vmov 1   ;;  %v281_v5 = vmov 2   ;;  %v282_v6 = vmov 6   ;;  %v42_v7 = vld [vmem:[%s364_s2] sm:$0xff]  ;;  %v283_v8 = vmov 3   ;;  %s285_s8 = smov [#allocation7]  }
  0x15   :  { %55 = vperm.xlu1 %197, %v41_v2   ;;  %45 = vperm.xlu0 %195, %v41_v2   ;;  %v284_v9 = vmov 7   ;;  %v49_v11 = vshrl.u32 %v48_v10, 7  ;;  %v39_v17 = vld [vmem:[#allocation4] sm:$0xff]  ;;  %s160_s9 = sshll.u32 %s285_s8, 4  ;;  %s286_s10 = smov [#allocation8]   ;;  %s161_s9 = int_to_ptr.vmem [resolvable:$true] %s160_s9 }
  0x16   :  { %v183_v51 = vld [vmem:[%s365_s3] ss:$0 sm:$0xff]  ;;  %s170_s11 = sshll.u32 %s286_s10, 4  ;;  %s226_s12 = scalar_lea.vmem %s161_s9, 128  ;;  %s171_s11 = int_to_ptr.vmem [resolvable:$true] %s170_s11 }
  0x17   :  { %v70_v14 = vsub.s32 1, %v49_v11  ;;  %v50_v15 = vsub.s32 0, %v49_v11  ;;  %v91_v16 = vsub.s32 2, %v49_v11  ;;  %v80_v22 = vsub.s32 5, %v49_v11  ;;  %p227_p8 = scmp.ne.s32.totalorder %s161_s9, %s226_s12  ;;  %p231_p9 = scmp.lt.s32.totalorder %s161_s9, %s161_s9 }
  0x18   :  { %v101_v24 = vsub.s32 6, %v49_v11  ;;  %v60_v25 = vsub.s32 4, %v49_v11  ;;  %v112_v27 = vsub.s32 3, %v49_v11  ;;  %v122_v37 = vsub.s32 7, %v49_v11  ;;  %p232_p10 = scmp.lt.s32.totalorder %s226_s12, %s226_s12 }
  0x19   :  { %198 = vset.pattern.permute.xlu1 %v279_v3  ;;  %196 = vset.pattern.permute.xlu0 %v280_v4  ;;  %v71_v19 = vrot.slane %v39_v17, %v70_v14  ;;  %v51_v21 = vrot.slane %v39_v17, %v50_v15  ;;  %v92_v23 = vrot.slane %v39_v17, %v91_v16 }
  0x1a   :  { %75 = vperm.xlu1 %198, %v41_v2   ;;  %65 = vperm.xlu0 %196, %v41_v2   ;;  %v81_v30 = vrot.slane %v39_v17, %v80_v22  ;;  %v102_v32 = vrot.slane %v39_v17, %v101_v24  ;;  %v61_v34 = vrot.slane %v39_v17, %v60_v25  ;;  %p233_p11 = por %p232_p10, %p231_p9 }
  0x1b   :  { %v113_v36 = vrot.slane %v39_v17, %v112_v27  ;;  %v123_v46 = vrot.slane %v39_v17, %v122_v37 }
  0x1c   :  { %p234_p12 = pnand %p233_p11, %p227_p8 }
  0x1e   :  { %199 = vset.pattern.permute.xlu1 %v281_v5  ;;  %200 = vset.pattern.permute.xlu0 %v282_v6 }
  0x1f   :  { %86 = vperm.xlu1 %199, %v41_v2   ;;  %96 = vperm.xlu0 %200, %v41_v2  }
  0x23   :  { %201 = vset.pattern.permute.xlu1 %v283_v8  ;;  %203 = vset.pattern.permute.xlu0 %v278_v1 }
  0x24   :  { %107 = vperm.xlu1 %201, %v41_v2   ;;  %129 = vperm.xlu0 %203, %v42_v7  }
  0x28   :  { %202 = vset.pattern.permute.xlu1 %v284_v9 }
  0x29   :  { %117 = vperm.xlu1 %202, %v41_v2  }
  0x94   :  { %v56_v12 = vpop.permute.xlu1 %55  ;;  %v46_v13 = vpop.permute.xlu0 %45 }
  0x95   :  { %v52_v29 = vmul.f32 %v51_v21, %v46_v13  ;;  %v62_v43 = vmul.f32 %v61_v34, %v56_v12 }
  0x97   :  { %v53_v38 = vadd.f32 0.5, %v52_v29 }
  0x99   :  { %v76_v18 = vpop.permute.xlu1 %75  ;;  %v66_v20 = vpop.permute.xlu0 %65  ;;  %v63_v47 = vadd.f32 %v62_v43, %v53_v38 }
  0x9a   :  { %v72_v26 = vmul.f32 %v71_v19, %v66_v20  ;;  %v82_v39 = vmul.f32 %v81_v30, %v76_v18 }
  0x9c   :  { %v73_v35 = vadd.f32 0.5, %v72_v26 }
  0x9e   :  { %v87_v28 = vpop.permute.xlu1 %86  ;;  %v97_v33 = vpop.permute.xlu0 %96  ;;  %v83_v44 = vadd.f32 %v82_v39, %v73_v35 }
  0x9f   :  { %v93_v31 = vmul.f32 %v92_v23, %v87_v28  ;;  %v103_v41 = vmul.f32 %v102_v32, %v97_v33 }
  0xa0   :  { %v84_v52 = vmul.f32 %v83_v44, %v63_v47 }
  0xa1   :  { %v94_v40 = vadd.f32 0.5, %v93_v31 }
  0xa3   :  { %v108_v42 = vpop.permute.xlu1 %107  ;;  %v104_v48 = vadd.f32 %v103_v41, %v94_v40  ;;  %v130_v50 = vpop.permute.xlu0 %129 }
  0xa4   :  { %v114_v45 = vmul.f32 %v113_v36, %v108_v42  ;;  %v138_v57 = vmul.f32 %v183_v51, %v130_v50 }
  0xa5   :  { %v105_v55 = vmul.f32 %v104_v48, %v84_v52 }
  0xa6   :  { %v115_v53 = vadd.f32 0.5, %v114_v45 }
  0xa8   :  { %v118_v49 = vpop.permute.xlu1 %117 }
  0xa9   :  { %v124_v54 = vmul.f32 %v123_v46, %v118_v49 }
  0xab   :  { %v125_v56 = vadd.f32 %v124_v54, %v115_v53 }
  0xad   :  { %v126_v58 = vmul.f32 %v125_v56, %v105_v55 }
  0xaf   :  { %v139_v59 = vmul.f32 %v138_v57, %v126_v58  ;;  %v140_v60 = vmul.f32 %v126_v58, %v126_v58 }
  0xb1   :  { %151 = vst [vmem:[#allocation7] sm:$0xff] %v139_v59  ;;  %153 = vst [vmem:[#allocation8] sm:$0xff] %v140_v60 }
  0xb2   :  { %237 = shalt.err (!%p234_p12)
}
  0xb3   :  { %s238_s14 = scalar_lea.hbm %s366_s4, 128 }
  0xb4   :  { %p239_p13 = scmp.ne.s32.totalorder %s366_s4, %s238_s14  ;;  %p242_p0 = scmp.lt.u32.totalorder %s238_s14, %s366_s4 }
  0xb6   :  { %p244_p1 = pnand %p242_p0, %p239_p13 }
  0xb8   :  { %247 = shalt.err (!%p244_p1)
}
  0xb9   :  { %163 = dma.vmem_to_hbm [thread:$0]  %s161_s9, 128, %s366_s4, [#allocation6]  }
  0xba   :  { %s248_s21 = scalar_lea.vmem %s171_s11, 128  ;;  %p253_p3 = scmp.lt.s32.totalorder %s171_s11, %s171_s11 }
  0xbb   :  { %p249_p2 = scmp.ne.s32.totalorder %s171_s11, %s248_s21  ;;  %p254_p4 = scmp.lt.s32.totalorder %s248_s21, %s248_s21 }
  0xbd   :  { %p255_p5 = por %p254_p4, %p253_p3 }
  0xbf   :  { %p256_p6 = pnand %p255_p5, %p249_p2 }
  0xc1   :  { %259 = shalt.err (!%p256_p6)
}
  0xc2   :  { %s260_s24 = scalar_lea.hbm %s367_s5, 128 }
  0xc3   :  { %p261_p7 = scmp.ne.s32.totalorder %s367_s5, %s260_s24  ;;  %p264_p8 = scmp.lt.u32.totalorder %s260_s24, %s367_s5 }
  0xc5   :  { %p266_p9 = pnand %p264_p8, %p261_p7 }
  0xc7   :  { %269 = shalt.err (!%p266_p9)
}
  0xc8   :  { %173 = dma.vmem_to_hbm [thread:$0]  %s171_s11, 128, %s367_s5, [#allocation9]  }
  0xc9   :  { %272 = dma.done.wait [#allocation6], 128  }
  0xca   :  { %273 = vsyncadd [#allocation6], 4294967168 }
  0xcb   :  { %274 = dma.done.wait [#allocation9], 128  }
  0xcc   :  { %275 = vsyncadd [#allocation9], 4294967168 }
  0xcd   :  { %180 = vsyncpa [#allocation5], 1 }
  0xce   :  { %181 = vsyncpa [#allocation6], 1 }
  0xcf   :  { %182 = vsyncpa [#allocation9], 1 }

</bundles_post_ra>
